<compile_context>
chip_gen: v5e
topology: v5e:2x2
jax: 0.10.0
libtpu: 0.0.40
codegen_flags: <defaults>
</compile_context>

<pallas_src>
import functools

import jax
import jax.numpy as jnp
from jax.experimental import pallas as pl
from jax.experimental.pallas import tpu as pltpu


def _vmem_capacity_bytes():
    try:
        cap = int(pltpu.get_tpu_info().vmem_capacity_bytes)
        if cap > 0:
            return cap
    except Exception:
        pass
    return 64 << 20  # conservative (v7x-sized) fallback


def _num_tensorcores():
    """2 on v7x-class parts (two TensorCores share one Pallas grid), else 1."""
    try:
        kind = jax.devices()[0].device_kind.lower()
    except Exception:
        return 1
    return 2 if ("v7" in kind or "7x" in kind) else 1


def _choose_tile_hw(hw, row_bytes, budget_bytes):
    """Lane-safe tile: a multiple of 128 that divides hw, or the full hw."""
    if hw % 128 != 0:
        return hw  # only the full-extent block is layout-legal
    max_tile = max(1, budget_bytes // max(row_bytes, 1))
    if hw <= max_tile:
        return hw
    best = 128  # 128 always divides hw in this branch
    for d in range(256, min(max_tile, hw) + 1, 128):
        if hw % d == 0:
            best = d
    return best


def _fused_bn_kernel(x_ref, gamma_ref, beta_ref, o_ref, *, n, c, inv_count, eps):
    """Whole-array path: stats + normalize in one kernel (1 read + 1 write)."""
    x = x_ref[...].astype(jnp.float32)                      # (N*C, HW)
    s = jnp.sum(x, axis=-1, keepdims=True)                  # (N*C, 1)
    q = jnp.sum(x * x, axis=-1, keepdims=True)              # (N*C, 1)
    # Fold the N groups back to C (static sublane slices; n is small/static).
    s_c = s[0:c, :]
    q_c = q[0:c, :]
    for i in range(1, n):
        s_c = s_c + s[i * c:(i + 1) * c, :]
        q_c = q_c + q[i * c:(i + 1) * c, :]
    mean = s_c * inv_count                                  # (C, 1)
    # E[x^2] - E[x]^2 can cancel catastrophically for |mean| >> std; clamp.
    var = jnp.maximum(q_c * inv_count - mean * mean, 0.0)
    inv_std = jax.lax.rsqrt(var + eps)
    scale = gamma_ref[...] * inv_std                        # (C, 1)
    shift = beta_ref[...] - mean * scale                    # (C, 1)
    scale_nc = jnp.concatenate([scale] * n, axis=0)         # (N*C, 1)
    shift_nc = jnp.concatenate([shift] * n, axis=0)
    o_ref[...] = (x * scale_nc + shift_nc).astype(o_ref.dtype)


def _stats_kernel(x_ref, psum_ref, psq_ref, acc_s_ref, acc_q_ref):
    # Grid = (P, Tp): axis 0 ("parallel") partitions HW across TensorCores
    # (P=1 on single-TC chips), axis 1 ("arbitrary") reduces over HW tiles.
    t = pl.program_id(1)

    @pl.when(t == 0)
    def _():
        acc_s_ref[...] = jnp.zeros_like(acc_s_ref)
        acc_q_ref[...] = jnp.zeros_like(acc_q_ref)

    x = x_ref[...].astype(jnp.float32)          # (N*C, tile_hw)
    # Full-lane-width accumulation: pure VPU adds in the steady state; the
    # cross-lane (XLU) reduction happens once, at the last step.
    acc_s_ref[...] += x
    acc_q_ref[...] += x * x

    @pl.when(t == pl.num_programs(1) - 1)
    def _():
        psum_ref[...] = jnp.sum(acc_s_ref[...], axis=-1, keepdims=True)[None]
        psq_ref[...] = jnp.sum(acc_q_ref[...], axis=-1, keepdims=True)[None]


def _normalize_kernel(x_ref, scale_ref, shift_ref, o_ref):
    # scale/shift are precomputed per (n, c) row, so this is a pure FMA stream.
    x = x_ref[...].astype(jnp.float32)          # (N*C, tile_hw)
    o_ref[...] = (x * scale_ref[...] + shift_ref[...]).astype(o_ref.dtype)


def batchnorm2d_pallas(x, gamma, beta, eps=1e-5, block_budget_bytes=None):
    """BatchNorm2d forward (training-mode batch stats) via Pallas TPU kernels."""
    N, C, H, W = x.shape
    HW = H * W
    NC = N * C
    inv_count = 1.0 / float(N * HW)
    itemsize = jnp.dtype(x.dtype).itemsize
    x_bytes = NC * HW * itemsize

    vmem_cap = _vmem_capacity_bytes()
    vmem_limit = int(min(vmem_cap // 2, 64 << 20))
    if block_budget_bytes is None:
        block_budget_bytes = vmem_cap // 16     # ~8 MiB v5e/v6e, ~4 MiB v7x
        fused_limit = vmem_cap // 12
    else:
        fused_limit = block_budget_bytes

    x2d = x.reshape(NC, HW)                     # free reshape, no copy

    if x_bytes <= fused_limit:
        # ---- Fused single pass: 1 HBM read + 1 write, one kernel launch ----
        gamma_c = gamma.astype(jnp.float32).reshape(C, 1)
        beta_c = beta.astype(jnp.float32).reshape(C, 1)
        kern = functools.partial(_fused_bn_kernel, n=N, c=C,
                                 inv_count=inv_count, eps=float(eps))
        y2d = pl.pallas_call(
            kern,
            out_shape=jax.ShapeDtypeStruct((NC, HW), x.dtype),
            grid=(1,),
            in_specs=[
                pl.BlockSpec((NC, HW), lambda i: (0, 0)),
                pl.BlockSpec((C, 1), lambda i: (0, 0)),
                pl.BlockSpec((C, 1), lambda i: (0, 0)),
            ],
            out_specs=pl.BlockSpec((NC, HW), lambda i: (0, 0)),
            compiler_params=pltpu.CompilerParams(
                dimension_semantics=("arbitrary",),
                vmem_limit_bytes=vmem_limit),
            cost_estimate=pl.CostEstimate(
                flops=5 * NC * HW, transcendentals=C,
                bytes_accessed=2 * x_bytes),
        )(x2d, gamma_c, beta_c)
        return y2d.reshape(N, C, H, W)

    # ---- Two-pass path for large x ----
    tile_hw = _choose_tile_hw(HW, NC * itemsize, block_budget_bytes)
    T = HW // tile_hw
    num_tc = _num_tensorcores()
    P = num_tc if (T >= num_tc and T % num_tc == 0) else 1
    Tp = T // P

    # Pass 1: per-row (n, c) partial sum / sum-of-squares per core partition.
    psum, psq = pl.pallas_call(
        _stats_kernel,
        out_shape=(
            jax.ShapeDtypeStruct((P, NC, 1), jnp.float32),
            jax.ShapeDtypeStruct((P, NC, 1), jnp.float32),
        ),
        grid=(P, Tp),
        in_specs=[
            pl.BlockSpec((NC, tile_hw), lambda p, t: (0, p * Tp + t)),
        ],
        out_specs=(
            pl.BlockSpec((1, NC, 1), lambda p, t: (p, 0, 0)),
            pl.BlockSpec((1, NC, 1), lambda p, t: (p, 0, 0)),
        ),
        scratch_shapes=[
            pltpu.VMEM((NC, tile_hw), jnp.float32),
            pltpu.VMEM((NC, tile_hw), jnp.float32),
        ],
        compiler_params=pltpu.CompilerParams(
            dimension_semantics=("parallel", "arbitrary"),
            vmem_limit_bytes=vmem_limit),
        cost_estimate=pl.CostEstimate(
            flops=3 * NC * HW, transcendentals=0,
            bytes_accessed=x_bytes + 2 * P * NC * 4),
    )(x2d)

    # Tiny jnp epilogue (hoisted out of the normalize kernel): combine the P
    # partitions, fold N, and compute per-row scale/shift exactly once.
    s = psum.reshape(P * N, C).sum(axis=0)                  # (C,)
    ss = psq.reshape(P * N, C).sum(axis=0)                  # (C,)
    mean = s * inv_count
    var = jnp.maximum(ss * inv_count - mean * mean, 0.0)    # cancellation clamp
    inv_std = jax.lax.rsqrt(var + jnp.float32(eps))
    scale = gamma.astype(jnp.float32) * inv_std             # (C,)
    shift = beta.astype(jnp.float32) - mean * scale         # (C,)
    scale_nc = jnp.tile(scale, (N,)).reshape(NC, 1)
    shift_nc = jnp.tile(shift, (N,)).reshape(NC, 1)

    # Pass 2: elementwise normalize, fully parallel over lane-dense HW tiles.
    y2d = pl.pallas_call(
        _normalize_kernel,
        out_shape=jax.ShapeDtypeStruct((NC, HW), x.dtype),
        grid=(T,),
        in_specs=[
            pl.BlockSpec((NC, tile_hw), lambda t: (0, t)),
            pl.BlockSpec((NC, 1), lambda t: (0, 0)),
            pl.BlockSpec((NC, 1), lambda t: (0, 0)),
        ],
        out_specs=pl.BlockSpec((NC, tile_hw), lambda t: (0, t)),
        compiler_params=pltpu.CompilerParams(
            dimension_semantics=("parallel",),
            vmem_limit_bytes=vmem_limit),
        cost_estimate=pl.CostEstimate(
            flops=2 * NC * HW, transcendentals=0,
            bytes_accessed=2 * x_bytes),
    )(x2d, scale_nc, shift_nc)

    # TODO(synk): input_output_aliases={0: 0} on the normalize call would let
    # XLA reuse x's HBM buffer for y when callers no longer need x; left off
    # here because this script reuses x for the reference comparison.
    return y2d.reshape(N, C, H, W)


def batchnorm2d_ref(x, gamma, beta, eps=1e-5):
    xf = x.astype(jnp.float32)
    mean = jnp.mean(xf, axis=(0, 2, 3), keepdims=True)
    var = jnp.mean((xf - mean) ** 2, axis=(0, 2, 3), keepdims=True)  # biased
    y = (xf - mean) / jnp.sqrt(var + eps)
    return (y * gamma.reshape(1, -1, 1, 1) + beta.reshape(1, -1, 1, 1)).astype(
        x.dtype)


if __name__ == "__main__":
    key = jax.random.PRNGKey(0)
    keys = jax.random.split(key, 9)

    # 1) Shape implied by the module (BatchNorm2d(4) on small NCHW): fused path.
    N, C, H, W = 2, 4, 16, 16
    x = jax.random.normal(keys[0], (N, C, H, W), dtype=jnp.float32)
    gamma = 1.0 + 0.1 * jax.random.normal(keys[1], (C,), dtype=jnp.float32)
    beta = 0.1 * jax.random.normal(keys[2], (C,), dtype=jnp.float32)
    y = jax.block_until_ready(batchnorm2d_pallas(x, gamma, beta))
    assert y.shape == x.shape and y.dtype == x.dtype
    assert jnp.max(jnp.abs(y - batchnorm2d_ref(x, gamma, beta))) < 1e-4, \
        "mismatch vs reference batchnorm (fused path)"

    # 2) Larger shape with a tiny explicit budget: exercises the two-pass,
    #    lane-tiled path (tile_hw=1024, T=4; 2-way core split on v7x).
    N2, C2, H2, W2 = 2, 8, 64, 64
    x2 = jax.random.normal(keys[3], (N2, C2, H2, W2), dtype=jnp.float32)
    g2 = 1.0 + 0.1 * jax.random.normal(keys[4], (C2,), dtype=jnp.float32)
    b2 = 0.1 * jax.random.normal(keys[5], (C2,), dtype=jnp.float32)
    y2 = jax.block_until_ready(
        batchnorm2d_pallas(x2, g2, b2, block_budget_bytes=64 * 1024))
    assert jnp.max(jnp.abs(y2 - batchnorm2d_ref(x2, g2, b2))) < 1e-4, \
        "mismatch on tiled two-pass path"

    # 3) Non-128-multiple spatial extent through the two-pass path: exercises
    #    the lane-safe full-HW fallback (tile_hw == HW, T == 1).
    N3, C3, H3, W3 = 2, 3, 20, 20
    x3 = jax.random.normal(keys[6], (N3, C3, H3, W3), dtype=jnp.float32)
    g3 = 1.0 + 0.1 * jax.random.normal(keys[7], (C3,), dtype=jnp.float32)
    b3 = 0.1 * jax.random.normal(keys[8], (C3,), dtype=jnp.float32)
    y3 = jax.block_until_ready(
        batchnorm2d_pallas(x3, g3, b3, block_budget_bytes=1024))
    assert jnp.max(jnp.abs(y3 - batchnorm2d_ref(x3, g3, b3))) < 1e-4, \
        "mismatch on non-lane-aligned fallback path"

    # TODO(synk): PyTorch BatchNorm2d in training mode also updates
    # running_mean / running_var buffers; that module-state side effect is not
    # part of the forward output and is not produced here.
    print("KERNEL_OK")
</pallas_src>

<mosaic_0001>
module attributes {stable_mosaic.version = 11 : i64} {
  func.func @_fused_bn_kernel(%arg0: i32, %arg1: memref<8x256xf32, #tpu.memory_space<vmem>>, %arg2: memref<4x1xf32, #tpu.memory_space<vmem>>, %arg3: memref<4x1xf32, #tpu.memory_space<vmem>>, %arg4: memref<8x256xf32, #tpu.memory_space<vmem>>) attributes {dimension_semantics = [#tpu.dimension_semantics<arbitrary>], iteration_bounds = array<i64: 1>, scalar_prefetch = 0 : i64, scratch_operands = 0 : i64, tpu.core_type = #tpu.core_type<tc>, window_params = [{pipeline_mode = #tpu.pipeline_mode<synchronous>, transform_indices = @transform_0, window_bounds = array<i64: 8, 256>}, {pipeline_mode = #tpu.pipeline_mode<synchronous>, transform_indices = @transform_1, window_bounds = array<i64: 4, 1>}, {pipeline_mode = #tpu.pipeline_mode<synchronous>, transform_indices = @transform_2, window_bounds = array<i64: 4, 1>}, {pipeline_mode = #tpu.pipeline_mode<synchronous>, transform_indices = @transform_3, window_bounds = array<i64: 8, 256>}]} {
    %c0 = arith.constant 0 : index
    %c0_0 = arith.constant 0 : index
    %0 = vector.load %arg1[%c0, %c0_0] : memref<8x256xf32, #tpu.memory_space<vmem>>, vector<8x256xf32>
    %cst = arith.constant dense<0.000000e+00> : vector<8xf32>
    %1 = vector.multi_reduction <add>, %0, %cst [1] : vector<8x256xf32> to vector<8xf32>
    %2 = vector.shape_cast %1 : vector<8xf32> to vector<8x1xf32>
    %3 = arith.mulf %0, %0 : vector<8x256xf32>
    %cst_1 = arith.constant dense<0.000000e+00> : vector<8xf32>
    %4 = vector.multi_reduction <add>, %3, %cst_1 [1] : vector<8x256xf32> to vector<8xf32>
    %5 = vector.shape_cast %4 : vector<8xf32> to vector<8x1xf32>
    %6 = vector.extract_strided_slice %2 {offsets = [0, 0], sizes = [4, 1], strides = [1, 1]} : vector<8x1xf32> to vector<4x1xf32>
    %7 = vector.extract_strided_slice %5 {offsets = [0, 0], sizes = [4, 1], strides = [1, 1]} : vector<8x1xf32> to vector<4x1xf32>
    %8 = vector.extract_strided_slice %2 {offsets = [4, 0], sizes = [4, 1], strides = [1, 1]} : vector<8x1xf32> to vector<4x1xf32>
    %9 = arith.addf %6, %8 : vector<4x1xf32>
    %10 = vector.extract_strided_slice %5 {offsets = [4, 0], sizes = [4, 1], strides = [1, 1]} : vector<8x1xf32> to vector<4x1xf32>
    %11 = arith.addf %7, %10 : vector<4x1xf32>
    %cst_2 = arith.constant 0.001953125 : f32
    %12 = vector.broadcast %cst_2 : f32 to vector<4x1xf32>
    %13 = arith.mulf %9, %12 : vector<4x1xf32>
    %cst_3 = arith.constant 0.001953125 : f32
    %14 = vector.broadcast %cst_3 : f32 to vector<4x1xf32>
    %15 = arith.mulf %11, %14 : vector<4x1xf32>
    %16 = arith.mulf %13, %13 : vector<4x1xf32>
    %17 = arith.subf %15, %16 : vector<4x1xf32>
    %cst_4 = arith.constant 0.000000e+00 : f32
    %18 = vector.broadcast %cst_4 : f32 to vector<4x1xf32>
    %19 = arith.maximumf %17, %18 : vector<4x1xf32>
    %cst_5 = arith.constant 9.99999974E-6 : f32
    %20 = vector.broadcast %cst_5 : f32 to vector<4x1xf32>
    %21 = arith.addf %19, %20 : vector<4x1xf32>
    %22 = math.rsqrt %21 : vector<4x1xf32>
    %c0_6 = arith.constant 0 : index
    %c0_7 = arith.constant 0 : index
    %23 = vector.load %arg2[%c0_6, %c0_7] : memref<4x1xf32, #tpu.memory_space<vmem>>, vector<4x1xf32>
    %24 = arith.mulf %23, %22 : vector<4x1xf32>
    %c0_8 = arith.constant 0 : index
    %c0_9 = arith.constant 0 : index
    %25 = vector.load %arg3[%c0_8, %c0_9] : memref<4x1xf32, #tpu.memory_space<vmem>>, vector<4x1xf32>
    %26 = arith.mulf %13, %24 : vector<4x1xf32>
    %27 = arith.subf %25, %26 : vector<4x1xf32>
    %28 = tpu.concatenate %24, %24 in 0 : vector<4x1xf32>, vector<4x1xf32> -> vector<8x1xf32>
    %29 = tpu.concatenate %27, %27 in 0 : vector<4x1xf32>, vector<4x1xf32> -> vector<8x1xf32>
    %30 = vector.broadcast %28 : vector<8x1xf32> to vector<8x256xf32>
    %31 = arith.mulf %0, %30 : vector<8x256xf32>
    %32 = vector.broadcast %29 : vector<8x1xf32> to vector<8x256xf32>
    %33 = arith.addf %31, %32 : vector<8x256xf32>
    %c0_10 = arith.constant 0 : index
    %c0_11 = arith.constant 0 : index
    %34 = vector.load %arg4[%c0_10, %c0_11] : memref<8x256xf32, #tpu.memory_space<vmem>>, vector<8x256xf32>
    tpu.vector_store %arg4[%c0_10, %c0_11], %33 {strides = array<i32>} : memref<8x256xf32, #tpu.memory_space<vmem>>, vector<8x256xf32>,
    return
  }
  func.func @transform_0(%arg0: i32) -> (i32, i32) {
    %c0_i32 = arith.constant 0 : i32
    %c0_i32_0 = arith.constant 0 : i32
    %c0_i32_1 = arith.constant 0 : i32
    return %c0_i32, %c0_i32_0 : i32, i32
  }
  func.func @transform_1(%arg0: i32) -> (i32, i32) {
    %c0_i32 = arith.constant 0 : i32
    %c0_i32_0 = arith.constant 0 : i32
    %c0_i32_1 = arith.constant 0 : i32
    return %c0_i32, %c0_i32_0 : i32, i32
  }
  func.func @transform_2(%arg0: i32) -> (i32, i32) {
    %c0_i32 = arith.constant 0 : i32
    %c0_i32_0 = arith.constant 0 : i32
    %c0_i32_1 = arith.constant 0 : i32
    return %c0_i32, %c0_i32_0 : i32, i32
  }
  func.func @transform_3(%arg0: i32) -> (i32, i32) {
    %c0_i32 = arith.constant 0 : i32
    %c0_i32_0 = arith.constant 0 : i32
    %c0_i32_1 = arith.constant 0 : i32
    return %c0_i32, %c0_i32_0 : i32, i32
  }
}

</mosaic_0001>

<bundles_post_ra>
// kernel: tpu_custom_call.1
= control target key start
LH: loop header
LB: loop body
LE: loop exit
PB: predicated region body
PF: predicated region fallthrough
CT: control target
= control target key end

     0   :  { %8 = vsyncpa [#allocation3], 0  ;;  %s204_s0 = inlined_call_operand.hbm [shape: f32[8,256], index: 0, kind: input, shape index: {}]   ;;  %s205_s1 = inlined_call_operand.vmem [shape: f32[4,1], index: 1, kind: input, shape index: {}]   ;;  %s206_s2 = inlined_call_operand.vmem [shape: f32[4,1], index: 2, kind: input, shape index: {}]   ;;  %s207_s3 = inlined_call_operand.hbm [shape: f32[8,256], index: 3, kind: output, shape index: {}]  }
   0x1   :  { %9 = vsyncpa [#allocation4], 0  ;;  %s15_s14 = sshll.u32 %s204_s0, 4  ;;  %s169_s15 = smov [#allocation2]   ;;  %s16_s14 = int_to_ptr.hbm [resolvable:$true] %s15_s14 }
   0x2   :  { %s17_s16 = sshll.u32 %s169_s15, 4  ;;  %s18_s16 = int_to_ptr.vmem [resolvable:$true] %s17_s16 }
   0x3   :  { %20 = dma.hbm_to_vmem [thread:$0]  %s16_s14, 256, %s18_s16, [#allocation3]  }
   0x4   :  { %165 = dma.done.wait [#allocation3], 256  }
   0x5   :  { %166 = vsyncadd [#allocation3], 4294967040  ;;  %v29_v0 = vld [vmem:[#allocation2] sm:$0xff]  ;;  %v30_v1 = vld [vmem:[#allocation2 + $0x8] sm:$0xff]  ;;  %v170_v8 = vmov 0   ;;  %vm71_vm3 = vcmask 1043456  }
   0x6   :  { %v31_v2 = vadd.f32 %v30_v1, %v29_v0  ;;  %v34_v3 = vmul.f32 %v29_v0, %v29_v0  ;;  %v35_v4 = vmul.f32 %v30_v1, %v30_v1  ;;  %113 = vset.pattern.permute.xlu1 %v170_v8  ;;  %114 = vset.pattern.permute.xlu0 %v170_v8  ;;  %v63_v25 = vld [vmem:[%s205_s1] sm:$0xf]  ;;  %s171_s1 = smov [#allocation5]   ;;  %s100_s23 = sshll.u32 %s207_s3, 4  ;;  %s101_s23 = int_to_ptr.hbm [resolvable:$true] %s100_s23 }
   0x7   :  { %v65_v28 = vld [vmem:[%s206_s2] sm:$0xf]  ;;  %s98_s20 = sshll.u32 %s171_s1, 4  ;;  %s99_s20 = int_to_ptr.vmem [resolvable:$true] %s98_s20 }
   0x8   :  { %32 = vadd.xlane.f32.xlu0 %v31_v2  ;;  %v36_v5 = vadd.f32 %v35_v4, %v34_v3 }
  0x10   :  { %37 = vadd.xlane.f32.xlu0 %v36_v5 }
  0x7b   :  { %v33_v6 = vpop.xlane.xlu0 %32 }
  0x7c   :  { %v40_v7 = vrot.slane %v33_v6, 4 }
  0x7e   :  { %v42_v9 = vadd.f32 %v40_v7, %v33_v6 }
  0x80   :  { %v47_v11 = vmul.f32 0.001953125, %v42_v9 }
  0x82   :  { %v49_v14 = vmul.f32 %v47_v11, %v47_v11 }
  0x83   :  { %v38_v10 = vpop.xlane.xlu0 %37 }
  0x84   :  { %v44_v12 = vrot.slane %v38_v10, 4 }
  0x86   :  { %v46_v13 = vadd.f32 %v44_v12, %v38_v10 }
  0x88   :  { %v48_v15 = vmul.f32 0.001953125, %v46_v13 }
  0x8a   :  { %v50_v16 = vsub.f32 %v48_v15, %v49_v14 }
  0x8c   :  { %v51_v17 = vmax.f32 %v50_v16, 0.0 }
  0x8e   :  { %v52_v18 = vadd.f32 1e-05, %v51_v17 }
  0x90   :  { %115 = vrsqrt.f32 %v52_v18  ;;  %vm59_vm1 = vweird.f32 %v52_v18 }
  0x96   :  { %v116_v19 = vpop.eup %115 }
  0x97   :  { %v54_v20 = vmul.f32 %v116_v19, %v52_v18  ;;  %vm60_vm0 = vweird.f32 %v116_v19 }
  0x98   :  { %vm61_vm2 = vmor %vm59_vm1, %vm60_vm0 }
  0x99   :  { %v55_v21 = vmul.f32 %v116_v19, %v54_v20 }
  0x9b   :  { %v56_v22 = vmul.f32 0.5, %v55_v21 }
  0x9d   :  { %v57_v23 = vsub.f32 1.5, %v56_v22 }
  0x9f   :  { %v58_v24 = vmul.f32 %v116_v19, %v57_v23 }
  0xa1   :  { %v62_v26 = vsel %vm61_vm2, %v116_v19, %v58_v24 }
  0xa2   :  { %v64_v27 = vmul.f32 %v63_v25, %v62_v26 }
  0xa4   :  { %v69_v29 = vrot.slane %v64_v27, 4  ;;  %v66_v30 = vmul.f32 %v64_v27, %v47_v11 }
  0xa6   :  { %v72_v31 = vsel %vm71_vm3, %v64_v27, %v69_v29  ;;  %v67_v32 = vsub.f32 %v65_v28, %v66_v30 }
  0xa7   :  { %79 = vperm.xlu1 %113, %v72_v31  }
  0xa8   :  { %v74_v33 = vrot.slane %v67_v32, 4 }
  0xaa   :  { %v76_v34 = vsel %vm71_vm3, %v67_v32, %v74_v33 }
  0xaf   :  { %86 = vperm.xlu1 %113, %v76_v34  }
 0x119   :  { %v80_v35 = vpop.permute.xlu1 %79 }
 0x11a   :  { %v82_v36 = vmul.f32 %v80_v35, %v29_v0  ;;  %v83_v37 = vmul.f32 %v80_v35, %v30_v1 }
 0x121   :  { %v87_v38 = vpop.permute.xlu1 %86 }
 0x122   :  { %v89_v39 = vadd.f32 %v87_v38, %v82_v36  ;;  %v90_v40 = vadd.f32 %v87_v38, %v83_v37 }
 0x124   :  { %91 = vst [vmem:[#allocation5] sm:$0xff] %v89_v39 }
 0x125   :  { %92 = vst [vmem:[#allocation5 + $0x8] sm:$0xff] %v90_v40 }
 0x126   :  { %103 = dma.vmem_to_hbm [thread:$0]  %s99_s20, 256, %s101_s23, [#allocation4]  }
 0x127   :  { %167 = dma.done.wait [#allocation4], 256  }
 0x128   :  { %168 = vsyncadd [#allocation4], 4294967040 }
 0x129   :  { %108 = vsyncpa [#allocation3], 1 }
 0x12a   :  { %109 = vsyncpa [#allocation4], 1 }

</bundles_post_ra>
